<compile_context>
chip_gen: v5e
topology: v5e:2x2
jax: 0.10.0
libtpu: 0.0.40
codegen_flags: <defaults>
</compile_context>

<pallas_src>
import jax
import jax.numpy as jnp
from jax import lax
from jax.experimental import pallas as pl
from jax.experimental.pallas import tpu as pltpu


def _up_kernel(x_ref, coef_ref, bias_ref, alpha_ref, o_ref):
    # x_ref/o_ref: (BN, CF, TL) f32 VMEM blocks (lane-dense spatial slab).
    # coef_ref:    (C, CF, 1)   f32 VMEM; coef[d, o*F+f] = w[o, (o+d) % C].
    # bias_ref:    (CF, 1)      f32 VMEM; bias[o*F+f]    = b[o].
    # alpha_ref:   (1,)         f32 SMEM; shared PReLU slope.
    BN, CF, TL = x_ref.shape
    C = coef_ref.shape[0]
    F = CF // C

    alpha = alpha_ref[0]
    bias = bias_ref[...]                        # (CF, 1), lane-broadcast later
    coefs = [coef_ref[d] for d in range(C)]     # C x (CF, 1) — tiny, stays in vregs

    def mix_chunk(nb, start, width):
        x_img = x_ref[nb, :, pl.ds(start, width)]           # (CF, width), full sublanes
        acc = coefs[0] * x_img
        for d in range(1, C):
            # Cyclic sublane shift by d*F rows: row (o*F+f) <- channel (o+d)%C.
            x_rot = jnp.concatenate(
                [x_img[d * F:, :], x_img[:d * F, :]], axis=0)
            acc = acc + coefs[d] * x_rot
        y = acc + bias
        y = jnp.where(y > 0, y, alpha * y)                   # PReLU (shared alpha)
        o_ref[nb, :, pl.ds(start, width)] = y                # one unmasked full store

    # Walk the (up to 64K-lane) block in 1024-lane chunks: each chunk's live
    # values are ~30 vregs (no spills) while the big BlockSpec tile amortizes
    # the per-grid-step pipeline overhead.
    chunk = min(1024, TL)
    n_full = TL // chunk
    rem = TL - n_full * chunk

    def body(t, carry):
        start = pl.multiple_of(t * chunk, chunk)
        for nb in range(BN):
            mix_chunk(nb, start, chunk)
        return carry

    lax.fori_loop(0, n_full, body, 0)
    if rem > 0:
        for nb in range(BN):
            mix_chunk(nb, n_full * chunk, rem)


def up_forward(x, conv_w, conv_b, prelu_alpha):
    """DHDN `_up` forward: PixelShuffle(2)(PReLU(Conv2d_1x1(x))).

    x: (N, C, H, W) f32; conv_w: (C, C, 1, 1); conv_b: (C,);
    prelu_alpha: scalar (PyTorch PReLU default num_parameters=1).
    Returns (N, C//4, 2H, 2W) f32.
    """
    N, C, H, W = x.shape
    Cout = conv_w.shape[0]
    assert Cout == C and conv_w.shape[1] == C
    assert C % 4 == 0, "PixelShuffle(2) requires channels divisible by 4"

    # ---- Sublane fold: view NCHW as (N, C*F, (H/F)*W) with C*F == 8 when
    # possible (pure view).  Folded row o*F+f == channel o, H-chunk f.
    F = 1
    if C < 8 and 8 % C == 0 and H % (8 // C) == 0:
        F = 8 // C
    CF = C * F
    L2 = (H // F) * W
    x2 = x.reshape(N, CF, L2).astype(jnp.float32)

    # ---- Per-sublane coefficient columns for the CxC mix:
    # y[o*F+f] = sum_d coef[d, o*F+f] * x[((o+d)%C)*F + f] + bias[o*F+f].
    w_mat = conv_w.reshape(C, C).astype(jnp.float32)
    oo = jnp.arange(C)
    coef = jnp.stack([w_mat[oo, (oo + d) % C] for d in range(C)], axis=0)  # (C, C)
    coef = jnp.repeat(coef, F, axis=1).reshape(C, CF, 1)
    bias = jnp.repeat(conv_b.astype(jnp.float32), F).reshape(CF, 1)
    alpha = jnp.asarray(prelu_alpha, jnp.float32).reshape(1)

    # ---- Tile selection: ~4 MiB of (in+out) HBM traffic per grid step to
    # amortize the ~0.35 us step overhead; double-buffered VMEM footprint is
    # ~8 MiB (fits the 32 MiB scoped default on v5e/v6e and v7x's 64 MiB).
    # Bump TL_TARGET ~2x on v7x if desired.
    TL_TARGET = 64 * 1024
    if L2 > TL_TARGET:
        TL, BN = TL_TARGET, 1               # 128-aligned tiles + edge clipping
    else:
        TL = L2                             # whole (folded) image per step
        per_image_bytes = CF * L2 * 4 * 2
        want = max(1, min(N, (4 << 20) // max(per_image_bytes, 1)))
        if N >= 2:                          # keep >=2 grid steps for v7x's 2 TCs
            want = min(want, N // 2)
        BN = 1
        for d in range(want, 0, -1):        # largest divisor of N <= want
            if N % d == 0:
                BN = d
                break
    grid = (N // BN, pl.cdiv(L2, TL))

    y2 = pl.pallas_call(
        _up_kernel,
        out_shape=jax.ShapeDtypeStruct((N, CF, L2), jnp.float32),
        grid=grid,
        in_specs=[
            pl.BlockSpec((BN, CF, TL), lambda nb, t: (nb, 0, t)),
            pl.BlockSpec((C, CF, 1), lambda nb, t: (0, 0, 0)),
            pl.BlockSpec((CF, 1), lambda nb, t: (0, 0)),
            pl.BlockSpec(memory_space=pltpu.MemorySpace.SMEM),
        ],
        out_specs=pl.BlockSpec((BN, CF, TL), lambda nb, t: (nb, 0, t)),
        compiler_params=pltpu.CompilerParams(
            dimension_semantics=("parallel", "parallel")),
    )(x2, coef, bias, alpha)

    # Undo the sublane fold (free reshape), then PixelShuffle(2) in XLA.
    y = y2.reshape(N, C, H, W)
    r = 2
    Cs = C // (r * r)
    y = y.reshape(N, Cs, r, r, H, W)
    y = jnp.transpose(y, (0, 1, 4, 2, 5, 3))
    return y.reshape(N, Cs, H * r, W * r)


if __name__ == "__main__":
    key = jax.random.PRNGKey(0)

    def reference(x, conv_w, conv_b, alpha):
        N, C, H, W = x.shape
        y = jnp.einsum("nchw,oc->nohw", x, conv_w.reshape(C, C),
                       precision=jax.lax.Precision.HIGHEST)
        y = y + conv_b[None, :, None, None]
        y = jnp.where(y > 0, y, alpha * y)
        y = y.reshape(N, C // 4, 2, 2, H, W).transpose(0, 1, 4, 2, 5, 3)
        return y.reshape(N, C // 4, 2 * H, 2 * W)

    alpha = jnp.float32(0.25)               # PyTorch PReLU default init

    # Config 1: even H -> full 8-sublane fold path.
    N, C, H, W = 2, 4, 16, 16
    k1, k2, k3, key = jax.random.split(key, 4)
    x = jax.random.normal(k1, (N, C, H, W), dtype=jnp.float32)
    conv_w = jax.random.normal(k2, (C, C, 1, 1), dtype=jnp.float32) * 0.1
    conv_b = jax.random.normal(k3, (C,), dtype=jnp.float32) * 0.1

    out = up_forward(x, conv_w, conv_b, alpha)
    jax.block_until_ready(out)
    ref = reference(x, conv_w, conv_b, alpha)
    assert out.shape == (N, C // 4, 2 * H, 2 * W)
    assert jnp.allclose(out, ref, atol=1e-5, rtol=1e-5), "mismatch (even H)"

    # Config 2: odd H / ragged width -> no fold, unaligned lane extent.
    N2, C2, H2, W2 = 1, 4, 7, 12
    k1, k2, k3, key = jax.random.split(key, 4)
    xb = jax.random.normal(k1, (N2, C2, H2, W2), dtype=jnp.float32)
    wb = jax.random.normal(k2, (C2, C2, 1, 1), dtype=jnp.float32) * 0.1
    bb = jax.random.normal(k3, (C2,), dtype=jnp.float32) * 0.1

    out2 = up_forward(xb, wb, bb, alpha)
    jax.block_until_ready(out2)
    ref2 = reference(xb, wb, bb, alpha)
    assert jnp.allclose(out2, ref2, atol=1e-5, rtol=1e-5), "mismatch (odd H)"

    print("KERNEL_OK")
</pallas_src>

<mosaic_0001>
module attributes {stable_mosaic.version = 11 : i64} {
  func.func @_up_kernel(%arg0: i32, %arg1: i32, %arg2: memref<1x8x128xf32, #tpu.memory_space<vmem>>, %arg3: memref<4x8x1xf32, #tpu.memory_space<vmem>>, %arg4: memref<8x1xf32, #tpu.memory_space<vmem>>, %arg5: memref<1xf32, #tpu.memory_space<smem>>, %arg6: memref<1x8x128xf32, #tpu.memory_space<vmem>>) attributes {dimension_semantics = [#tpu.dimension_semantics<parallel>, #tpu.dimension_semantics<parallel>], iteration_bounds = array<i64: 2, 1>, scalar_prefetch = 0 : i64, scratch_operands = 0 : i64, tpu.core_type = #tpu.core_type<tc>, window_params = [{transform_indices = @transform_0, window_bounds = array<i64: 1, 8, 128>}, {pipeline_mode = #tpu.pipeline_mode<synchronous>, transform_indices = @transform_1, window_bounds = array<i64: 4, 8, 1>}, {pipeline_mode = #tpu.pipeline_mode<synchronous>, transform_indices = @transform_2, window_bounds = array<i64: 8, 1>}, {transform_indices = @transform_3, window_bounds = array<i64: 1>}, {transform_indices = @transform_4, window_bounds = array<i64: 1, 8, 128>}]} {
    %c0 = arith.constant 0 : index
    %0 = memref.load %arg5[%c0] : memref<1xf32, #tpu.memory_space<smem>>
    %c0_0 = arith.constant 0 : index
    %c0_1 = arith.constant 0 : index
    %1 = vector.load %arg4[%c0_0, %c0_1] : memref<8x1xf32, #tpu.memory_space<vmem>>, vector<8x1xf32>
    %c0_2 = arith.constant 0 : index
    %c0_3 = arith.constant 0 : index
    %c0_4 = arith.constant 0 : index
    %2 = vector.load %arg3[%c0_2, %c0_3, %c0_4] : memref<4x8x1xf32, #tpu.memory_space<vmem>>, vector<1x8x1xf32>
    %3 = vector.shape_cast %2 : vector<1x8x1xf32> to vector<8x1xf32>
    %c1 = arith.constant 1 : index
    %c0_5 = arith.constant 0 : index
    %c0_6 = arith.constant 0 : index
    %4 = vector.load %arg3[%c1, %c0_5, %c0_6] : memref<4x8x1xf32, #tpu.memory_space<vmem>>, vector<1x8x1xf32>
    %5 = vector.shape_cast %4 : vector<1x8x1xf32> to vector<8x1xf32>
    %c2 = arith.constant 2 : index
    %c0_7 = arith.constant 0 : index
    %c0_8 = arith.constant 0 : index
    %6 = vector.load %arg3[%c2, %c0_7, %c0_8] : memref<4x8x1xf32, #tpu.memory_space<vmem>>, vector<1x8x1xf32>
    %7 = vector.shape_cast %6 : vector<1x8x1xf32> to vector<8x1xf32>
    %c3 = arith.constant 3 : index
    %c0_9 = arith.constant 0 : index
    %c0_10 = arith.constant 0 : index
    %8 = vector.load %arg3[%c3, %c0_9, %c0_10] : memref<4x8x1xf32, #tpu.memory_space<vmem>>, vector<1x8x1xf32>
    %9 = vector.shape_cast %8 : vector<1x8x1xf32> to vector<8x1xf32>
    %c0_i32 = arith.constant 0 : i32
    %c128_i32 = arith.constant 128 : i32
    %10 = arith.muli %c0_i32, %c128_i32 : i32
    %11 = tpu.assume_multiple %10, 128 : i32
    %c0_11 = arith.constant 0 : index
    %c0_12 = arith.constant 0 : index
    %12 = arith.index_cast %11 : i32 to index
    %13 = vector.load %arg2[%c0_11, %c0_12, %12] : memref<1x8x128xf32, #tpu.memory_space<vmem>>, vector<1x8x128xf32>
    %14 = vector.shape_cast %13 : vector<1x8x128xf32> to vector<8x128xf32>
    %15 = vector.broadcast %3 : vector<8x1xf32> to vector<8x128xf32>
    %16 = arith.mulf %15, %14 : vector<8x128xf32>
    %17 = vector.extract_strided_slice %14 {offsets = [2, 0], sizes = [6, 128], strides = [1, 1]} : vector<8x128xf32> to vector<6x128xf32>
    %18 = vector.extract_strided_slice %14 {offsets = [0, 0], sizes = [2, 128], strides = [1, 1]} : vector<8x128xf32> to vector<2x128xf32>
    %19 = tpu.concatenate %17, %18 in 0 : vector<6x128xf32>, vector<2x128xf32> -> vector<8x128xf32>
    %20 = vector.broadcast %5 : vector<8x1xf32> to vector<8x128xf32>
    %21 = arith.mulf %20, %19 : vector<8x128xf32>
    %22 = arith.addf %16, %21 : vector<8x128xf32>
    %23 = vector.extract_strided_slice %14 {offsets = [4, 0], sizes = [4, 128], strides = [1, 1]} : vector<8x128xf32> to vector<4x128xf32>
    %24 = vector.extract_strided_slice %14 {offsets = [0, 0], sizes = [4, 128], strides = [1, 1]} : vector<8x128xf32> to vector<4x128xf32>
    %25 = tpu.concatenate %23, %24 in 0 : vector<4x128xf32>, vector<4x128xf32> -> vector<8x128xf32>
    %26 = vector.broadcast %7 : vector<8x1xf32> to vector<8x128xf32>
    %27 = arith.mulf %26, %25 : vector<8x128xf32>
    %28 = arith.addf %22, %27 : vector<8x128xf32>
    %29 = vector.extract_strided_slice %14 {offsets = [6, 0], sizes = [2, 128], strides = [1, 1]} : vector<8x128xf32> to vector<2x128xf32>
    %30 = vector.extract_strided_slice %14 {offsets = [0, 0], sizes = [6, 128], strides = [1, 1]} : vector<8x128xf32> to vector<6x128xf32>
    %31 = tpu.concatenate %29, %30 in 0 : vector<2x128xf32>, vector<6x128xf32> -> vector<8x128xf32>
    %32 = vector.broadcast %9 : vector<8x1xf32> to vector<8x128xf32>
    %33 = arith.mulf %32, %31 : vector<8x128xf32>
    %34 = arith.addf %28, %33 : vector<8x128xf32>
    %35 = vector.broadcast %1 : vector<8x1xf32> to vector<8x128xf32>
    %36 = arith.addf %34, %35 : vector<8x128xf32>
    %cst = arith.constant 0.000000e+00 : f32
    %37 = vector.broadcast %cst : f32 to vector<8x128xf32>
    %38 = arith.cmpf ogt, %36, %37 : vector<8x128xf32>
    %39 = vector.broadcast %0 : f32 to vector<8x128xf32>
    %40 = arith.mulf %39, %36 : vector<8x128xf32>
    %41 = arith.select %38, %36, %40 : vector<8x128xi1>, vector<8x128xf32>
    %c0_13 = arith.constant 0 : index
    %c0_14 = arith.constant 0 : index
    %42 = arith.index_cast %11 : i32 to index
    %43 = vector.load %arg6[%c0_13, %c0_14, %42] : memref<1x8x128xf32, #tpu.memory_space<vmem>>, vector<1x8x128xf32>
    %44 = vector.shape_cast %43 : vector<1x8x128xf32> to vector<8x128xf32>
    %45 = vector.shape_cast %41 : vector<8x128xf32> to vector<1x8x128xf32>
    tpu.vector_store %arg6[%c0_13, %c0_14, %42], %45 {strides = array<i32>} : memref<1x8x128xf32, #tpu.memory_space<vmem>>, vector<1x8x128xf32>,
    %c1_i32 = arith.constant 1 : i32
    return
  }
  func.func @transform_0(%arg0: i32, %arg1: i32) -> (i32, i32, i32) {
    %c0_i32 = arith.constant 0 : i32
    %c0_i32_0 = arith.constant 0 : i32
    return %arg0, %c0_i32, %arg1 : i32, i32, i32
  }
  func.func @transform_1(%arg0: i32, %arg1: i32) -> (i32, i32, i32) {
    %c0_i32 = arith.constant 0 : i32
    %c0_i32_0 = arith.constant 0 : i32
    %c0_i32_1 = arith.constant 0 : i32
    %c0_i32_2 = arith.constant 0 : i32
    return %c0_i32, %c0_i32_0, %c0_i32_1 : i32, i32, i32
  }
  func.func @transform_2(%arg0: i32, %arg1: i32) -> (i32, i32) {
    %c0_i32 = arith.constant 0 : i32
    %c0_i32_0 = arith.constant 0 : i32
    %c0_i32_1 = arith.constant 0 : i32
    return %c0_i32, %c0_i32_0 : i32, i32
  }
  func.func @transform_3(%arg0: i32, %arg1: i32) -> i32 {
    %c0_i32 = arith.constant 0 : i32
    %c0_i32_0 = arith.constant 0 : i32
    return %c0_i32 : i32
  }
  func.func @transform_4(%arg0: i32, %arg1: i32) -> (i32, i32, i32) {
    %c0_i32 = arith.constant 0 : i32
    %c0_i32_0 = arith.constant 0 : i32
    return %arg0, %c0_i32, %arg1 : i32, i32, i32
  }
}

</mosaic_0001>

<bundles_post_ra>
// kernel: tpu_custom_call.1
= control target key start
LH: loop header
LB: loop body
LE: loop exit
PB: predicated region body
PF: predicated region fallthrough
CT: control target
= control target key end

     0   :  { %s662_s0 = inlined_call_operand.vmem [shape: f32[2,8,128], index: 0, kind: input, shape index: {}]   ;;  %s663_s1 = inlined_call_operand.vmem [shape: f32[4,8,1], index: 1, kind: input, shape index: {}]   ;;  %s664_s2 = inlined_call_operand.vmem [shape: f32[8,1], index: 2, kind: input, shape index: {}]   ;;  %s665_s3 = inlined_call_operand.<no memory space> [shape: f32[1], index: 3, kind: input, shape index: {}]   ;;  %s666_s4 = inlined_call_operand.hbm [shape: f32[2,8,128], index: 4, kind: output, shape index: {}]  }
   0x1   :  { %9 = sst [smem:[#allocation2]] %s665_s3 }
   0x2   :  { %10 = vsyncpa [#allocation4], 0 }
   0x3   :  { %12 = vsyncpa [#allocation4 + $0x1], 0  ;;  %s550_s17 = smov 0   ;;  %s552_s18 = smov 0  }
   0x4   :  { %s554_s19 = smov 0   ;;  %s556_s20 = smov 0  }
   0x5   :  { %s558_s21 = smov 0   ;;  %s560_s22 = smov 0  }
   0x6 LB: > { %s368_s3 = sadd.s32 4294967295, %s519_s22   ;;  %s369_s23 = sadd.s32 4294967294, %s519_s22   ;;  %s519_s22 = sphi %s560_s22, %s18_s22   ;;  %s515_s21 = sphi %s558_s21, %s673_s21   ;;  %s511_s20 = sphi %s556_s20, %s672_s20   ;;  %s507_s19 = sphi %s554_s19, %s671_s19   ;;  %s503_s18 = sphi %s552_s18, %s670_s18   ;;  %s499_s17 = sphi %s550_s17, %s669_s17  }
   0x7   : > { %s30_s24 = sadd.s32 1, %s515_s21  ;;  %s130_s25 = sadd.s32 1, %s507_s19 }
   0x8   : > { %p32_p0 = scmp.ge.s32.totalorder %s30_s24, 2  ;;  %p140_p1 = scmp.ne.s32.totalorder %s507_s19, %s503_s18 }
   0x9   : > { %p141_p2 = scmp.eq.s32.totalorder %s368_s3, 1  ;;  %p146_p3 = scmp.ne.s32.totalorder %s503_s18, %s499_s17 }
   0xa   : > { %s675_s24 = smov (%p32_p0, %s30_s24), 0  ;;  %p147_p5 = scmp.eq.s32.totalorder %s369_s23, 1 }
   0xb   : > { %p590_p4 = por %p141_p2, %p140_p1  ;;  %s125_s27 = ssub.s32 %s515_s21, %s675_s24 }
   0xc   : > { %p372_p6 = scmp.ge.s32.totalorder %s519_s22, 1  ;;  %p128_p7 = scmp.eq.s32.totalorder %s125_s27, 0 }
   0xd   : > { %p597_p8 = por %p147_p5, %p146_p3  ;;  %p184_p9 = scmp.lt.s32.totalorder %s519_s22, 3 }
   0xe   : > { %s603_s29 = scalar_select %p128_p7, %s507_s19, %s130_s25  }
   0xf   : > { %p185_p10 = pnand %p372_p6, %p184_p9 }
  0x10   : > { %p212_p11 = scmp.lt.s32.totalorder (!%p185_p10), %s511_s20, 1  ;;  %s219_s25 = sld [smem:[#allocation2]] (!%p185_p10) }
  0x11   : > { %188 = sbr.rel (%p185_p10) target bundleno = 163 (0xa3), region = 36  ;;  %s209_s27 = sand.u32 (!%p185_p10), 1, %s503_s18  }
  0x12   : > { %s373_s30 = sshll.u32 (!%p185_p10), %s209_s27, 3  ;;  %s379_s5 = sshll.u32 (!%p185_p10), %s511_s20, 3 }
  0x13   : > { %s292_s8 = scalar_lea.hbm (!%p185_p10), %s666_s4, %s379_s5  ;;  %s211_s9 = scalar_lea.vmem (!%p185_p10), [#allocation3], %s373_s30 }
  0x14   : > { %s294_s10 = sshll.u32 (!%p185_p10), %s211_s9, 4  ;;  %s296_s11 = sshll.u32 (!%p185_p10), %s292_s8, 4  ;;  %s295_s10 = int_to_ptr.vmem [resolvable:$true] %s294_s10  ;;  %s297_s11 = int_to_ptr.hbm [resolvable:$true] %s296_s11 }
  0x15   : > { %s455_s12 = sshra.s32 (!%p185_p10), %s297_s11, 4  ;;  %s461_s16 = scalar_lea.hbm (!%p185_p10), %s666_s4, 16  ;;  %s456_s12 = int_to_ptr.hbm [resolvable:$true] %s455_s12 }
  0x16   : > { %v376_v0 = vld [vmem:[%s663_s1 + $0x10] sm:$0xff]  ;;  %v221_v1 = vld [vmem:[%s663_s1] sm:$0xff]  ;;  %v521_v2 = vmov 0   ;;  %v377_v4 = vld [vmem:[%s663_s1 + $0x18] sm:$0xff]  ;;  %s213_s14 = scalar_select %p212_p11, %s511_s20, 1  ;;  %v276_v22 = vstv %s219_s25 }
  0x17   : > { %439 = vset.pattern.permute.xlu1 %v521_v2  ;;  %438 = vset.pattern.permute.xlu0 %v521_v2  ;;  %v220_v3 = vld [vmem:[%s664_s2] sm:$0xff]  ;;  %v375_v5 = vld [vmem:[%s663_s1 + $0x8] sm:$0xff]  ;;  %s281_s20 = scalar_lea.sflag [#allocation4], %s209_s27  ;;  %s457_s13 = scalar_lea.hbm %s456_s12, 8 }
  0x18   : > { %253 = vperm.xlu1 %439, %v376_v0   ;;  %231 = vperm.xlu0 %438, %v221_v1   ;;  %s374_s15 = sshll.u32 %s213_s14, 3  ;;  %p458_p12 = scmp.ne.s32.totalorder %s456_s12, %s457_s13 }
  0x19   : > { %440 = vset.pattern.permute.xlu2 %v521_v2  ;;  %s218_s23 = scalar_lea.vmem %s662_s0, %s374_s15  ;;  %p462_p1 = scmp.lt.s32.totalorder %s456_s12, %s666_s4 }
  0x1a   : > { %271 = vperm.xlu2 %440, %v220_v3   ;;  %v228_v8 = vld [vmem:[%s218_s23] sm:$0xff]  ;;  %p459_p13 = pnand %p458_p12, %p590_p4  ;;  %p463_p2 = scmp.lt.s32.totalorder %s461_s16, %s457_s13 }
  0x1b   : > { %v236_v9 = vrot.slane %v228_v8, 2  ;;  %v247_v10 = vrot.slane %v228_v8, 4  ;;  %v258_v13 = vrot.slane %v228_v8, 6 }
  0x1c   : > { %p460_p0 = pneg %p459_p13  ;;  %p464_p3 = por %p463_p2, %p462_p1 }
  0x1e   : > { %p465_p5 = pnand %p464_p3, %p460_p0 }
  0x20   : > { %264 = vperm.xlu1 %439, %v377_v4   ;;  %242 = vperm.xlu0 %438, %v375_v5  }
  0x74   : > { %v272_v20 = vpop.permute.xlu2 %271 }
  0x8a   : > { %v254_v6 = vpop.permute.xlu1 %253  ;;  %v232_v7 = vpop.permute.xlu0 %231 }
  0x8b   : > { %v234_v12 = vmul.f32 %v232_v7, %v228_v8  ;;  %v256_v16 = vmul.f32 %v254_v6, %v247_v10 }
  0x92   : > { %v243_v11 = vpop.permute.xlu0 %242  ;;  %v265_v15 = vpop.permute.xlu1 %264 }
  0x93   : > { %v245_v14 = vmul.f32 %v243_v11, %v236_v9  ;;  %v267_v18 = vmul.f32 %v265_v15, %v258_v13 }
  0x95   : > { %v246_v17 = vadd.f32 %v245_v14, %v234_v12 }
  0x97   : > { %v257_v19 = vadd.f32 %v256_v16, %v246_v17 }
  0x99   : > { %v268_v21 = vadd.f32 %v267_v18, %v257_v19 }
  0x9b   : > { %v274_v23 = vadd.f32 %v272_v20, %v268_v21 }
  0x9d   : > { %vm275_vm0 = vcmp.gt.f32.partialorder %v274_v23, 0.0  ;;  %v277_v24 = vmul.f32 %v276_v22, %v274_v23 }
  0x9f   : > { %v278_v25 = vsel %vm275_vm0, %v274_v23, %v277_v24 }
  0xa0   : > { %279 = vst [vmem:[%s211_s9] sm:$0xff] %v278_v25 }
  0xa1   : > { %468 = shalt.err (!%p465_p5)
}
  0xa2   : > { %382 = dma.vmem_to_hbm [thread:$0]  (%p590_p4), %s295_s10, 128, %s297_s11, %s281_s20  }
  0xa3 PF: > { %p388_p6 = scmp.ge.s32.totalorder %s519_s22, 2  ;;  %s308_s25 = sand.u32 1, %s499_s17  }
  0xa4   : > { %s309_s27 = scalar_lea.sflag [#allocation4], %s308_s25 }
  0xa5   : > { %p385_p7 = pnand %p388_p6, %p597_p8 }
  0xa7   : > { %p386_p9 = pneg %p385_p7 }
  0xa9   : > { %494 = dma.done.wait (%p386_p9), %s309_s27, 128  }
  0xaa   : > { %496 = vsyncadd (%p386_p9), %s309_s27, 4294967168  ;;  %s18_s22 = sadd.s32 1, %s519_s22   ;;  %s669_s17 = smov %s503_s18 }
  0xab   : > { %p15_p10 = scmp.ge.s32.totalorder %s18_s22, 4   ;;  %s670_s18 = smov %s507_s19 }
  0xac   : > { %s671_s19 = smov %s603_s29  ;;  %s672_s20 = smov %s515_s21 }
  0xad   : > { %s673_s21 = smov %s675_s24  ;;  %17 = sbr.rel (!%p15_p10) target bundleno = 6 (0x6), region = 74 }
  0xb2   :  { %315 = vsyncpa [#allocation4], 1 }
  0xb3   :  { %317 = vsyncpa [#allocation4 + $0x1], 1 }

</bundles_post_ra>
